<compile_context>
chip_gen: v7x
topology: tpu7x:2x2x1
jax: 0.10.0
libtpu: 0.0.40
codegen_flags: <defaults>
</compile_context>

<pallas_src>
import functools

import jax
import jax.numpy as jnp
from jax import lax
from jax.experimental import pallas as pl
from jax.experimental.pallas import tpu as pltpu


# ----------------------------------------------------------------------------
# Pallas kernel: single-K-block matmul fused with ReLU, bf16 in / bf16 out.
# ----------------------------------------------------------------------------
def _matmul_relu_kernel(a_ref, b_ref, o_ref):
    # bf16 x bf16 -> f32 accumulate on the MXU; ReLU fused on the f32 result;
    # store bf16 (halves the output HBM write in this mem-bound regime).
    acc = jnp.dot(a_ref[...], b_ref[...], preferred_element_type=jnp.float32)
    o_ref[...] = jnp.maximum(acc, 0.0).astype(o_ref.dtype)


def _conv_matmul_relu(a_p, b_p, *, tm):
    """relu(a_p @ b_p) with a Pallas TPU kernel.

    a_p: (Mp, Kp) bf16 (padded), b_p: (Kp, Np) bf16 (padded, Np == 128).
    Returns (Mp, Np) bf16.  Kp is a single block (no reduction grid axis);
    the grid is 1-D over M tiles only.
    """
    Mp, Kp = a_p.shape
    Kp2, Np = b_p.shape
    assert Kp == Kp2 and Mp % tm == 0 and Np % 128 == 0 and Kp % 128 == 0

    return pl.pallas_call(
        _matmul_relu_kernel,
        out_shape=jax.ShapeDtypeStruct((Mp, Np), jnp.bfloat16),
        grid=(Mp // tm,),
        in_specs=[
            pl.BlockSpec((tm, Kp), lambda i: (i, 0)),
            # Block index constant along i -> weight tile DMA'd once.
            pl.BlockSpec((Kp, Np), lambda i: (0, 0)),
        ],
        out_specs=pl.BlockSpec((tm, Np), lambda i: (i, 0)),
        compiler_params=pltpu.CompilerParams(
            # M axis parallel so v7x megacore can shard rows across its 2 TCs.
            dimension_semantics=("parallel",),
        ),
    )(a_p, b_p)


# ----------------------------------------------------------------------------
# Glue: im2col (bf16, padded directly to the kernel's tile shape) + weights.
# ----------------------------------------------------------------------------
def _im2col_padded(x, kh, kw, stride, pad, kp, mp):
    """x: (N, C, H, W) -> patches (Mp, Kp), K-order (C, KH, KW), zero padded."""
    n, c, h, w = x.shape
    oh = (h + 2 * pad - kh) // stride + 1
    ow = (w + 2 * pad - kw) // stride + 1
    xp = jnp.pad(x, ((0, 0), (0, 0), (pad, pad), (pad, pad)))

    cols = []
    for i in range(kh):
        for j in range(kw):
            cols.append(
                xp[:, :, i : i + stride * oh : stride, j : j + stride * ow : stride]
            )  # (N, C, OH, OW)
    cols = jnp.stack(cols, axis=0).reshape(kh, kw, n, c, oh, ow)
    cols = cols.transpose(2, 4, 5, 3, 0, 1).reshape(n * oh * ow, c * kh * kw)
    m = n * oh * ow
    # Single fused pad to the kernel's (Mp, Kp) tile shape (zeros are inert
    # in the matmul accumulation and ReLU(0)=0 channels are sliced off).
    cols = jnp.pad(cols, ((0, mp - m), (0, kp - c * kh * kw)))
    return cols, oh, ow


@functools.partial(jax.jit, static_argnames=("stride", "pad"))
def alexnet_conv1_forward(x, weight, *, stride=4, pad=2):
    """relu(conv2d(x, weight, stride=4, padding=2, bias=False)).

    x:      (N, 3, H, W)    float32, NCHW
    weight: (96, 3, 11, 11) float32 (OIHW, as in PyTorch)
    returns (N, 96, OH, OW) bfloat16 (bf16 activations; cast if f32 is needed)
    """
    oc, ic, kh, kw = weight.shape
    n, c, h, w = x.shape
    assert c == ic
    oh = (h + 2 * pad - kh) // stride + 1
    ow = (w + 2 * pad - kw) // stride + 1
    m = n * oh * ow
    k = ic * kh * kw

    kp = pl.cdiv(k, 128) * 128        # 363 -> 384 (single K block)
    np_ = pl.cdiv(oc, 128) * 128      # 96  -> 128 (lane-dense output stores)
    m128 = pl.cdiv(m, 128) * 128

    # M tile: up to 2048 rows to amortize per-grid-step overhead, but keep
    # >= ~8 grid steps at large M so v7x's two TensorCores both get work.
    tm = min(2048, max(512, (m128 // 8) // 128 * 128))
    tm = min(tm, m128)
    mp = pl.cdiv(m, tm) * tm

    # bf16 inputs to the kernel (halves A/B HBM traffic); f32 accumulation.
    x_bf = x.astype(jnp.bfloat16)
    patches, _, _ = _im2col_padded(x_bf, kh, kw, stride, pad, kp, mp)  # (Mp, Kp)

    w_mat = weight.astype(jnp.bfloat16).reshape(oc, k)
    w_mat = jnp.pad(w_mat, ((0, np_ - oc), (0, kp - k))).T             # (Kp, 128)

    out_p = _conv_matmul_relu(patches, w_mat, tm=tm)                   # (Mp, 128) bf16

    # Channel/M un-pad + reshape + NCHW transpose: one fused bf16 XLA copy.
    out = out_p[:m, :oc].reshape(n, oh, ow, oc)
    return out.transpose(0, 3, 1, 2)                                   # -> NCHW, bf16


# ----------------------------------------------------------------------------
# Pure-JAX reference (same bf16-input / f32-accumulate precision) for checking.
# ----------------------------------------------------------------------------
def _reference(x, weight, *, stride=4, pad=2):
    y = lax.conv_general_dilated(
        x.astype(jnp.bfloat16),
        weight.astype(jnp.bfloat16),
        window_strides=(stride, stride),
        padding=((pad, pad), (pad, pad)),
        dimension_numbers=("NCHW", "OIHW", "NCHW"),
        preferred_element_type=jnp.float32,
    )
    return jnp.maximum(y, 0.0)


if __name__ == "__main__":
    key = jax.random.PRNGKey(0)
    kx, kw_key = jax.random.split(key)

    # Small shapes consistent with the module: N=2, C=3, H=W=35
    # -> conv output (2, 96, 8, 8) with kernel=11, stride=4, pad=2.
    N, C, H, W = 2, 3, 35, 35
    OC, KH, KW = 96, 11, 11

    x = jax.random.normal(kx, (N, C, H, W), dtype=jnp.float32)
    # Deterministic Kaiming-style init (module's __init__ specifies shapes only).
    fan_in = C * KH * KW
    weight = jax.random.normal(kw_key, (OC, C, KH, KW), dtype=jnp.float32) * (
        2.0 / fan_in
    ) ** 0.5

    out = jax.block_until_ready(alexnet_conv1_forward(x, weight))

    ref = _reference(x, weight)
    assert out.shape == ref.shape == (N, OC, 8, 8), (out.shape, ref.shape)
    assert out.dtype == jnp.bfloat16, out.dtype
    out_f32 = out.astype(jnp.float32)
    max_err = float(jnp.max(jnp.abs(out_f32 - ref)))
    # Output is bf16-rounded (and both paths use bf16 MXU inputs / f32 acc).
    assert jnp.allclose(out_f32, ref, atol=3e-2, rtol=3e-2), max_err

    print("KERNEL_OK")
</pallas_src>

<mosaic_0001>
module attributes {stable_mosaic.version = 11 : i64} {
  func.func @_matmul_relu_kernel(%arg0: i32, %arg1: memref<128x384xbf16, #tpu.memory_space<vmem>>, %arg2: memref<384x128xbf16, #tpu.memory_space<vmem>>, %arg3: memref<128x128xbf16, #tpu.memory_space<vmem>>) attributes {dimension_semantics = [#tpu.dimension_semantics<parallel>], iteration_bounds = array<i64: 1>, scalar_prefetch = 0 : i64, scratch_operands = 0 : i64, tpu.core_type = #tpu.core_type<tc>, window_params = [{transform_indices = @transform_0, window_bounds = array<i64: 128, 384>}, {pipeline_mode = #tpu.pipeline_mode<synchronous>, transform_indices = @transform_1, window_bounds = array<i64: 384, 128>}, {transform_indices = @transform_2, window_bounds = array<i64: 128, 128>}]} {
    %c0 = arith.constant 0 : index
    %c0_0 = arith.constant 0 : index
    %0 = vector.load %arg1[%c0, %c0_0] : memref<128x384xbf16, #tpu.memory_space<vmem>>, vector<128x384xbf16>
    %c0_1 = arith.constant 0 : index
    %c0_2 = arith.constant 0 : index
    %1 = vector.load %arg2[%c0_1, %c0_2] : memref<384x128xbf16, #tpu.memory_space<vmem>>, vector<384x128xbf16>
    %cst = arith.constant dense<0.000000e+00> : vector<128x128xf32>
    %2 = tpu.matmul %0, %1, %cst {dimension_numbers = #tpu.dot_dimension_numbers<[1], [0], [0], [1], [0, 0, 1, 1], [], []>} : vector<128x384xbf16>, vector<384x128xbf16>, vector<128x128xf32> -> vector<128x128xf32>
    %cst_3 = arith.constant 0.000000e+00 : f32
    %3 = vector.broadcast %cst_3 : f32 to vector<128x128xf32>
    %4 = arith.maximumf %2, %3 : vector<128x128xf32>
    %5 = arith.truncf %4 : vector<128x128xf32> to vector<128x128xbf16>
    %c0_4 = arith.constant 0 : index
    %c0_5 = arith.constant 0 : index
    %6 = vector.load %arg3[%c0_4, %c0_5] : memref<128x128xbf16, #tpu.memory_space<vmem>>, vector<128x128xbf16>
    tpu.vector_store %arg3[%c0_4, %c0_5], %5 {strides = array<i32>} : memref<128x128xbf16, #tpu.memory_space<vmem>>, vector<128x128xbf16>,
    return
  }
  func.func @transform_0(%arg0: i32) -> (i32, i32) {
    %c0_i32 = arith.constant 0 : i32
    %c0_i32_0 = arith.constant 0 : i32
    return %arg0, %c0_i32 : i32, i32
  }
  func.func @transform_1(%arg0: i32) -> (i32, i32) {
    %c0_i32 = arith.constant 0 : i32
    %c0_i32_0 = arith.constant 0 : i32
    %c0_i32_1 = arith.constant 0 : i32
    return %c0_i32, %c0_i32_0 : i32, i32
  }
  func.func @transform_2(%arg0: i32) -> (i32, i32) {
    %c0_i32 = arith.constant 0 : i32
    %c0_i32_0 = arith.constant 0 : i32
    return %arg0, %c0_i32 : i32, i32
  }
}

</mosaic_0001>

<bundles_post_ra>
// kernel: alexnet_conv1_forward.1
= control target key start
LH: loop header
LB: loop body
LE: loop exit
PB: predicated region body
PF: predicated region fallthrough
CT: control target
= control target key end

     0   :  { %s1167_s0 = inlined_call_operand.vmem [shape: bf16[128,384], index: 0, kind: input, shape index: {}]   ;;  %s1168_s1 = inlined_call_operand.vmem [shape: bf16[384,128], index: 1, kind: input, shape index: {}]   ;;  %s1169_s2 = inlined_call_operand.hbm [shape: bf16[128,128], index: 2, kind: output, shape index: {}]  }
   0x1   :  { %v913_v0 = vld [vmem:[%s1168_s1 + $0x40] sm:$0xff]   ;;  %v916_v3 = vld [vmem:[%s1168_s1 + $0x48] sm:$0xff]   ;;  %v919_v6 = vld [vmem:[%s1168_s1 + $0x50] sm:$0xff]  }
   0x2   :  { %v914_v1 = vld [vmem:[%s1168_s1] sm:$0xff]   ;;  %798 = vmatprep.subr.bf16.mxu0 %v913_v0  ;;  %v917_v4 = vld [vmem:[%s1168_s1 + $0x8] sm:$0xff]   ;;  %v920_v7 = vld [vmem:[%s1168_s1 + $0x10] sm:$0xff]  }
   0x3   :  { %v915_v2 = vld [vmem:[%s1168_s1 + $0x80] sm:$0xff]   ;;  %799 = vmatpush3.bf16.msra.mxu0 %v914_v1  ;;  %v918_v5 = vld [vmem:[%s1168_s1 + $0x88] sm:$0xff]   ;;  %v921_v8 = vld [vmem:[%s1168_s1 + $0x90] sm:$0xff]  }
   0x4   :  { %878 = vmatprep.subr.bf16.mxu1 %v915_v2  ;;  %800 = vmatprep.subr.bf16.mxu0 %v916_v3  ;;  %v922_v9 = vld [vmem:[%s1168_s1 + $0x58] sm:$0xff]   ;;  %v925_v12 = vld [vmem:[%s1168_s1 + $0x60] sm:$0xff]   ;;  %v928_v15 = vld [vmem:[%s1168_s1 + $0x68] sm:$0xff]  }
   0x5   :  { %879 = vmatpush3.bf16.msra.mxu1 %v915_v2  ;;  %v923_v10 = vld [vmem:[%s1168_s1 + $0x18] sm:$0xff]   ;;  %v927_v13 = vld [vmem:[%s1168_s1 + $0xa0] sm:$0xff]   ;;  %v930_v16 = vld [vmem:[%s1168_s1 + $0xa8] sm:$0xff]  }
   0x6   :  { %880 = vmatprep.subr.bf16.mxu1 %v918_v5  ;;  %v924_v11 = vld [vmem:[%s1168_s1 + $0x98] sm:$0xff]   ;;  %v926_v14 = vld [vmem:[%s1168_s1 + $0x20] sm:$0xff]   ;;  %v929_v17 = vld [vmem:[%s1168_s1 + $0x28] sm:$0xff]  }
   0x7   :  { %801 = vmatpush3.bf16.msra.mxu0 %v917_v4  ;;  %v931_v18 = vld [vmem:[%s1168_s1 + $0x70] sm:$0xff]   ;;  %v934_v21 = vld [vmem:[%s1168_s1 + $0x78] sm:$0xff]   ;;  %v937_v26 = vld [vmem:[%s1167_s0] ss:$12 sps:$4 sm:$0xff]  }
   0x8   :  { %802 = vmatprep.subr.bf16.mxu0 %v919_v6  ;;  %v932_v19 = vld [vmem:[%s1168_s1 + $0x30] sm:$0xff]   ;;  %v936_v22 = vld [vmem:[%s1168_s1 + $0xb8] sm:$0xff]   ;;  %v941_v28 = vld [vmem:[%s1167_s0 + $0x20] ss:$12 sps:$4 sm:$0xff]  }
   0x9   :  { %881 = vmatpush3.bf16.msra.mxu1 %v918_v5  ;;  %v933_v20 = vld [vmem:[%s1168_s1 + $0xb0] sm:$0xff]   ;;  %v935_v25 = vld [vmem:[%s1168_s1 + $0x38] sm:$0xff]  }
   0xa   :  { %882 = vmatprep.subr.bf16.mxu1 %v921_v8  ;;  %v939_v23 = vld [vmem:[%s1167_s0 + $0x4] ss:$12 sps:$4 sm:$0xff]   ;;  %v940_v24 = vld [vmem:[%s1167_s0 + $0x8] ss:$12 sps:$4 sm:$0xff]  }
   0xb   :  { %803 = vmatpush3.bf16.msra.mxu0 %v920_v7  ;;  %397 = vmatprep.mubr.bf16.mxu0 %v939_v23  ;;  %v942_v27 = vld [vmem:[%s1167_s0 + $0x1c] ss:$12 sps:$4 sm:$0xff]   ;;  %v948_v29 = vld [vmem:[%s1167_s0 + $0x38] ss:$12 sps:$4 sm:$0xff]   ;;  %v945_v31 = vld [vmem:[%s1167_s0 + $0x34] ss:$12 sps:$4 sm:$0xff]  }
   0xc   :  { %804 = vmatprep.subr.bf16.mxu0 %v922_v9  ;;  %894 = vmatprep.mubr.bf16.mxu1 %v940_v24  ;;  %v944_v30 = vld [vmem:[%s1167_s0 + $0x18] ss:$12 sps:$4 sm:$0xff]   ;;  %v949_v32 = vld [vmem:[%s1167_s0 + $0x50] ss:$12 sps:$4 sm:$0xff]   ;;  %v956_v33 = vld [vmem:[%s1167_s0 + $0x68] ss:$12 sps:$4 sm:$0xff]  }
   0xd   :  { %883 = vmatpush3.bf16.msra.mxu1 %v921_v8 }
   0xe   :  { %884 = vmatprep.subr.bf16.mxu1 %v924_v11 }
   0xf   :  { %805 = vmatpush3.bf16.msra.mxu0 %v923_v10 }
  0x10   :  { %806 = vmatprep.subr.bf16.mxu0 %v925_v12 }
  0x11   :  { %885 = vmatpush3.bf16.msra.mxu1 %v924_v11 }
  0x12   :  { %886 = vmatprep.subr.bf16.mxu1 %v927_v13 }
  0x13   :  { %807 = vmatpush3.bf16.msra.mxu0 %v926_v14 }
  0x14   :  { %808 = vmatprep.subr.bf16.mxu0 %v928_v15 }
  0x15   :  { %887 = vmatpush3.bf16.msra.mxu1 %v927_v13 }
  0x16   :  { %888 = vmatprep.subr.bf16.mxu1 %v930_v16 }
  0x17   :  { %809 = vmatpush3.bf16.msra.mxu0 %v929_v17 }
  0x18   :  { %810 = vmatprep.subr.bf16.mxu0 %v931_v18 }
  0x19   :  { %889 = vmatpush3.bf16.msra.mxu1 %v930_v16 }
  0x1a   :  { %890 = vmatprep.subr.bf16.mxu1 %v933_v20 }
  0x1b   :  { %811 = vmatpush3.bf16.msra.mxu0 %v932_v19 }
  0x1c   :  { %812 = vmatprep.subr.bf16.mxu0 %v934_v21 }
  0x1d   :  { %891 = vmatpush3.bf16.msra.mxu1 %v933_v20 }
  0x1e   :  { %892 = vmatprep.subr.bf16.mxu1 %v936_v22 }
  0x1f   :  { %813 = vmatpush3.bf16.msra.mxu0 %v935_v25 }
  0x21   :  { %893 = vmatpush3.bf16.msra.mxu1 %v936_v22 }
  0x22   :  { %398 = vmatmul.mubr.bf16.vlgmr.msra.gmra.mrb[0].mxu0 %v937_v26 }
  0x23   :  { %405 = vmatprep.mubr.bf16.mxu0 %v942_v27 }
  0x24   :  { %895 = vmatmul.mubr.bf16.vlgmr.msra.gmra.mrb[0].mxu1 %v941_v28 }
  0x25   :  { %898 = vmatprep.mubr.bf16.mxu1 %v948_v29 }
  0x2a   :  { %406 = vmatmul.mubr.bf16.gmra.mrb[4].mxu0 %v944_v30 }
  0x2b   :  { %7 = vsyncpa [#allocation3], 0  ;;  %413 = vmatprep.mubr.bf16.mxu0 %v945_v31  ;;  %v947_v34 = vld [vmem:[%s1167_s0 + $0x30] ss:$12 sps:$4 sm:$0xff]   ;;  %v950_v35 = vld [vmem:[%s1167_s0 + $0x4c] ss:$12 sps:$4 sm:$0xff]  }
  0x2c   :  { %899 = vmatmul.mubr.bf16.gmra.mrb[4].mxu1 %v949_v32  ;;  %v957_v36 = vld [vmem:[%s1167_s0 + $0x80] ss:$12 sps:$4 sm:$0xff]   ;;  %v964_v37 = vld [vmem:[%s1167_s0 + $0x98] ss:$12 sps:$4 sm:$0xff]   ;;  %v952_v38 = vld [vmem:[%s1167_s0 + $0x48] ss:$12 sps:$4 sm:$0xff]  }
  0x2d   :  { %902 = vmatprep.mubr.bf16.mxu1 %v956_v33  ;;  %v953_v39 = vld [vmem:[%s1167_s0 + $0x64] ss:$12 sps:$4 sm:$0xff]   ;;  %v955_v41 = vld [vmem:[%s1167_s0 + $0x60] ss:$12 sps:$4 sm:$0xff]   ;;  %v958_v42 = vld [vmem:[%s1167_s0 + $0x7c] ss:$12 sps:$4 sm:$0xff]  }
  0x2e   :  { %v965_v40 = vld [vmem:[%s1167_s0 + $0xb0] ss:$12 sps:$4 sm:$0xff]   ;;  %v960_v43 = vld [vmem:[%s1167_s0 + $0x78] ss:$12 sps:$4 sm:$0xff]   ;;  %v961_v44 = vld [vmem:[%s1167_s0 + $0x94] ss:$12 sps:$4 sm:$0xff]  }
  0x2f   :  { %v963_v45 = vld [vmem:[%s1167_s0 + $0x90] ss:$12 sps:$4 sm:$0xff]   ;;  %v966_v46 = vld [vmem:[%s1167_s0 + $0xac] ss:$12 sps:$4 sm:$0xff]   ;;  %v968_v47 = vld [vmem:[%s1167_s0 + $0xa8] ss:$12 sps:$4 sm:$0xff]  }
  0x30   :  { %s993_s0 = smov [#allocation2]  }
  0x31   :  { %s660_s19 = sshll.u32 %s993_s0, 4  ;;  %s661_s19 = int_to_ptr.vmem [resolvable:$true] %s660_s19 }
  0x32   :  { %414 = vmatmul.mubr.bf16.gmra.mrb[8].mxu0 %v947_v34  ;;  %s969_s20 = scalar_lea.vmem %s661_s19, 1024  ;;  %p974_p1 = scmp.lt.s32.totalorder %s661_s19, %s661_s19 }
  0x33   :  { %421 = vmatprep.mubr.bf16.mxu0 %v950_v35  ;;  %p970_p0 = scmp.ne.s32.totalorder %s661_s19, %s969_s20  ;;  %p975_p2 = scmp.lt.s32.totalorder %s969_s20, %s969_s20 }
  0x34   :  { %903 = vmatmul.mubr.bf16.gmra.mrb[8].mxu1 %v957_v36 }
  0x35   :  { %906 = vmatprep.mubr.bf16.mxu1 %v964_v37  ;;  %p976_p3 = por %p975_p2, %p974_p1 }
  0x37   :  { %p977_p4 = pnand %p976_p3, %p970_p0 }
  0x3a   :  { %422 = vmatmul.mubr.bf16.gmra.mrb[12].mxu0 %v952_v38 }
  0x3b   :  { %429 = vmatprep.mubr.bf16.mxu0 %v953_v39 }
  0x3c   :  { %907 = vmatmul.mubr.bf16.gmra.mrb[12].mxu1 %v965_v40 }
  0x42   :  { %430 = vmatmul.mubr.bf16.gmra.mrb[16].mxu0 %v955_v41 }
  0x43   :  { %437 = vmatprep.mubr.bf16.mxu0 %v958_v42 }
  0x4a   :  { %438 = vmatmul.mubr.bf16.gmra.mrb[20].mxu0 %v960_v43 }
  0x4b   :  { %445 = vmatprep.mubr.bf16.mxu0 %v961_v44 }
  0x52   :  { %446 = vmatmul.mubr.bf16.gmra.mrb[24].mxu0 %v963_v45 }
  0x53   :  { %453 = vmatprep.mubr.bf16.mxu0 %v966_v46 }
  0x5a   :  { %454 = vmatmul.mubr.bf16.gmra.mrb[28].mxu0 %v968_v47 }
  0xf5   :  { %v814_v48 = vpop.f32.mrb[0].mxu0 }
  0xf6   :  { %v815_v49 = vpop.f32.mrb[1].mxu0 }
  0xf7   :  { %v816_v50 = vadd.f32 %v815_v49, %v814_v48  ;;  %v817_v51 = vpop.f32.mrb[2].mxu0  ;;  %v896_v52 = vpop.f32.mrb[0].mxu1 }
  0xf8   :  { %v818_v53 = vpop.f32.mrb[3].mxu0  ;;  %v496_v54 = vpop.f32.mrb[1].mxu1 }
  0xf9   :  { %v819_v55 = vadd.f32 %v818_v53, %v817_v51  ;;  %v497_v56 = vadd.f32 %v816_v50, %v496_v54  ;;  %v897_v57 = vpop.f32.mrb[2].mxu1 }
  0xfa   :  { %v499_v58 = vpop.f32.mrb[3].mxu1 }
  0xfb   :  { %v500_v59 = vadd.f32 %v819_v55, %v499_v58  ;;  %v559_v60 = vmax.f32 %v497_v56, 0.0 }
  0xfd   :  { %v560_v61 = vmax.f32 %v500_v59, 0.0  ;;  %v820_v62 = vpop.f32.mrb[4].mxu0 }
  0xfe   :  { %v821_v63 = vpop.f32.mrb[5].mxu0 }
  0xff   :  { %v754_v0 = vpack.c.bf16 %v560_v61, %v559_v60  ;;  %v822_v1 = vadd.f32 %v821_v63, %v820_v62  ;;  %v823_v2 = vpop.f32.mrb[6].mxu0  ;;  %v900_v3 = vpop.f32.mrb[4].mxu1 }
 0x100   :  { %v824_v4 = vpop.f32.mrb[7].mxu0  ;;  %v512_v5 = vpop.f32.mrb[5].mxu1 }
 0x101   :  { %755 = vst [vmem:[#allocation2] sm:$0xff] %v754_v0   ;;  %v505_v6 = vadd.f32 %v896_v52, %v822_v1  ;;  %v825_v7 = vadd.f32 %v824_v4, %v823_v2  ;;  %v901_v8 = vpop.f32.mrb[6].mxu1 }
 0x102   :  { %v515_v9 = vpop.f32.mrb[7].mxu1 }
 0x103   :  { %v508_v10 = vadd.f32 %v897_v57, %v825_v7  ;;  %v561_v11 = vmax.f32 %v505_v6, 0.0 }
 0x105   :  { %v562_v12 = vmax.f32 %v508_v10, 0.0  ;;  %v826_v13 = vpop.f32.mrb[8].mxu0 }
 0x106   :  { %v827_v14 = vpop.f32.mrb[9].mxu0 }
 0x107   :  { %v759_v15 = vpack.c.bf16 %v562_v12, %v561_v11  ;;  %v828_v16 = vadd.f32 %v827_v14, %v826_v13  ;;  %v829_v17 = vpop.f32.mrb[10].mxu0  ;;  %v904_v18 = vpop.f32.mrb[8].mxu1 }
 0x108   :  { %v830_v19 = vpop.f32.mrb[11].mxu0  ;;  %v528_v20 = vpop.f32.mrb[9].mxu1 }
 0x109   :  { %791 = vst [vmem:[#allocation2 + $0x8] sm:$0xff] %v759_v15   ;;  %v831_v21 = vadd.f32 %v830_v19, %v829_v17  ;;  %v513_v22 = vadd.f32 %v828_v16, %v512_v5  ;;  %v905_v23 = vpop.f32.mrb[10].mxu1 }
 0x10a   :  { %v531_v24 = vpop.f32.mrb[11].mxu1 }
 0x10b   :  { %v516_v25 = vadd.f32 %v831_v21, %v515_v9  ;;  %v563_v26 = vmax.f32 %v513_v22, 0.0 }
 0x10d   :  { %v564_v27 = vmax.f32 %v516_v25, 0.0  ;;  %v832_v28 = vpop.f32.mrb[12].mxu0 }
 0x10e   :  { %v833_v29 = vpop.f32.mrb[13].mxu0 }
 0x10f   :  { %v764_v30 = vpack.c.bf16 %v564_v27, %v563_v26  ;;  %v834_v31 = vadd.f32 %v833_v29, %v832_v28  ;;  %v835_v32 = vpop.f32.mrb[14].mxu0  ;;  %v908_v33 = vpop.f32.mrb[12].mxu1 }
 0x110   :  { %v836_v34 = vpop.f32.mrb[15].mxu0  ;;  %v544_v35 = vpop.f32.mrb[13].mxu1 }
 0x111   :  { %792 = vst [vmem:[#allocation2 + $0x10] sm:$0xff] %v764_v30   ;;  %v521_v36 = vadd.f32 %v900_v3, %v834_v31  ;;  %v837_v37 = vadd.f32 %v836_v34, %v835_v32  ;;  %v909_v38 = vpop.f32.mrb[14].mxu1 }
 0x112   :  { %v547_v39 = vpop.f32.mrb[15].mxu1 }
 0x113   :  { %v524_v40 = vadd.f32 %v901_v8, %v837_v37  ;;  %v565_v41 = vmax.f32 %v521_v36, 0.0 }
 0x115   :  { %v566_v42 = vmax.f32 %v524_v40, 0.0  ;;  %v838_v43 = vpop.f32.mrb[16].mxu0 }
 0x116   :  { %v839_v44 = vpop.f32.mrb[17].mxu0 }
 0x117   :  { %v769_v45 = vpack.c.bf16 %v566_v42, %v565_v41  ;;  %v840_v46 = vadd.f32 %v839_v44, %v838_v43  ;;  %v841_v47 = vpop.f32.mrb[18].mxu0 }
 0x118   :  { %v842_v48 = vpop.f32.mrb[19].mxu0 }
 0x119   :  { %793 = vst [vmem:[#allocation2 + $0x18] sm:$0xff] %v769_v45   ;;  %v843_v49 = vadd.f32 %v842_v48, %v841_v47  ;;  %v529_v50 = vadd.f32 %v840_v46, %v528_v20 }
 0x11b   :  { %v532_v51 = vadd.f32 %v843_v49, %v531_v24  ;;  %v567_v52 = vmax.f32 %v529_v50, 0.0 }
 0x11d   :  { %v568_v53 = vmax.f32 %v532_v51, 0.0  ;;  %v844_v54 = vpop.f32.mrb[20].mxu0 }
 0x11e   :  { %v845_v55 = vpop.f32.mrb[21].mxu0 }
 0x11f   :  { %v774_v56 = vpack.c.bf16 %v568_v53, %v567_v52  ;;  %v846_v57 = vadd.f32 %v845_v55, %v844_v54  ;;  %v847_v58 = vpop.f32.mrb[22].mxu0 }
 0x120   :  { %v848_v59 = vpop.f32.mrb[23].mxu0 }
 0x121   :  { %794 = vst [vmem:[#allocation2 + $0x20] sm:$0xff] %v774_v56   ;;  %v537_v60 = vadd.f32 %v904_v18, %v846_v57  ;;  %v849_v61 = vadd.f32 %v848_v59, %v847_v58 }
 0x123   :  { %v540_v62 = vadd.f32 %v905_v23, %v849_v61  ;;  %v569_v63 = vmax.f32 %v537_v60, 0.0 }
 0x125   :  { %v570_v0 = vmax.f32 %v540_v62, 0.0  ;;  %v850_v1 = vpop.f32.mrb[24].mxu0 }
 0x126   :  { %v851_v2 = vpop.f32.mrb[25].mxu0 }
 0x127   :  { %v779_v3 = vpack.c.bf16 %v570_v0, %v569_v63  ;;  %v852_v4 = vadd.f32 %v851_v2, %v850_v1  ;;  %v853_v5 = vpop.f32.mrb[26].mxu0 }
 0x128   :  { %v854_v6 = vpop.f32.mrb[27].mxu0 }
 0x129   :  { %795 = vst [vmem:[#allocation2 + $0x28] sm:$0xff] %v779_v3   ;;  %v855_v7 = vadd.f32 %v854_v6, %v853_v5  ;;  %v545_v8 = vadd.f32 %v852_v4, %v544_v35 }
 0x12b   :  { %v548_v9 = vadd.f32 %v855_v7, %v547_v39  ;;  %v571_v10 = vmax.f32 %v545_v8, 0.0 }
 0x12d   :  { %v572_v11 = vmax.f32 %v548_v9, 0.0  ;;  %v856_v12 = vpop.f32.mrb[28].mxu0 }
 0x12e   :  { %v857_v13 = vpop.f32.mrb[29].mxu0 }
 0x12f   :  { %v784_v14 = vpack.c.bf16 %v572_v11, %v571_v10  ;;  %v858_v15 = vadd.f32 %v857_v13, %v856_v12  ;;  %v859_v16 = vpop.f32.mrb[30].mxu0 }
 0x130   :  { %v860_v17 = vpop.f32.mrb[31].mxu0 }
 0x131   :  { %796 = vst [vmem:[#allocation2 + $0x30] sm:$0xff] %v784_v14   ;;  %v553_v18 = vadd.f32 %v908_v33, %v858_v15  ;;  %v861_v19 = vadd.f32 %v860_v17, %v859_v16 }
 0x133   :  { %v556_v20 = vadd.f32 %v909_v38, %v861_v19  ;;  %v573_v21 = vmax.f32 %v553_v18, 0.0 }
 0x135   :  { %v574_v22 = vmax.f32 %v556_v20, 0.0 }
 0x137   :  { %v789_v23 = vpack.c.bf16 %v574_v22, %v573_v21 }
 0x139   :  { %797 = vst [vmem:[#allocation2 + $0x38] sm:$0xff] %v789_v23  }
 0x13a   :  { %980 = shalt.err (!%p977_p4)
}
 0x13b   :  { %s981_s23 = scalar_lea.hbm %s1169_s2, 1024 }
 0x13c   :  { %p982_p5 = scmp.ne.s32.totalorder %s1169_s2, %s981_s23  ;;  %p985_p6 = scmp.lt.u32.totalorder %s981_s23, %s1169_s2 }
 0x13e   :  { %p987_p7 = pnand %p985_p6, %p982_p5 }
 0x140   :  { %990 = shalt.err (!%p987_p7)
}
 0x141   :  { %s994_s28 = smov 64   ;;  %s995_s29 = smov 4  }
 0x142   :  { %666 = dma.vmem_to_hbm [thread:$0]  %s661_s19, 1024, %s1169_s2, [#allocation3], %s994_s28, %s994_s28, %s995_s29  }
 0x143   :  { %991 = dma.done.wait [#allocation3], 1024  }
 0x144   :  { %992 = vsyncadd [#allocation3], 4294966272 }
 0x145   :  { %670 = vsyncpa [#allocation3], 1 }

</bundles_post_ra>
